<compile_context>
chip_gen: v7x
topology: tpu7x:2x2x1
jax: 0.10.0
libtpu: 0.0.40
codegen_flags: <defaults>
</compile_context>

<pallas_src>
import jax
import jax.numpy as jnp
from jax.experimental import pallas as pl
from jax.experimental.pallas import tpu as pltpu


def _flatten_expr(e):
    """Recursively flatten a nested-tuple expression into leaf token ids."""
    if isinstance(e, tuple):
        out = []
        for ee in e:
            out.extend(_flatten_expr(ee))
        return out
    return [int(e)]


def _leaf_counts(expr, vocab_size):
    """Per-vocab-id leaf multiplicities (valid because comp_fn = add)."""
    counts = [0] * vocab_size
    for tok in _flatten_expr(expr):
        counts[tok] += 1
    return counts


def objective_kernel(counts_ref, emb_ref, rep_ref, absdiff_ref):
    """Single grid step; everything resident in VMEM.

    counts_ref  : VMEM (1, V) f32  -- leaf multiplicity of each vocab id
    emb_ref     : VMEM (V, D)      -- full embedding table
    rep_ref     : VMEM (1, D)      -- target representation
    absdiff_ref : VMEM (1, D) f32  -- lane-dense per-lane |composed - rep|
                                      (final cross-lane sum done in wrapper)
    """
    counts = counts_ref[...].astype(jnp.float32)        # (1, V)
    emb = emb_ref[...].astype(jnp.float32)               # (V, D)
    # comp_fn = add  =>  composed = counts @ emb   (one small MXU matmul)
    composed = jnp.dot(counts, emb, preferred_element_type=jnp.float32)  # (1, D)
    # err_fn = L1: emit lane-dense partials; wrapper finishes the scalar sum.
    diff = composed - rep_ref[...].astype(jnp.float32)
    absdiff_ref[...] = jnp.abs(diff)


def objective_forward(rep, expr, emb_weight):
    """JAX/Pallas equivalent of Objective.forward(rep, expr)."""
    V, D = emb_weight.shape
    counts = jnp.asarray(_leaf_counts(expr, V), dtype=jnp.float32).reshape(1, V)
    rep2 = rep.reshape(1, D)

    absdiff = pl.pallas_call(
        objective_kernel,
        out_shape=jax.ShapeDtypeStruct((1, D), jnp.float32),
        grid=(1,),
        in_specs=[
            pl.BlockSpec((1, V), lambda i: (0, 0)),   # counts (full array)
            pl.BlockSpec((V, D), lambda i: (0, 0)),   # embedding table (full)
            pl.BlockSpec((1, D), lambda i: (0, 0)),   # target rep
        ],
        out_specs=pl.BlockSpec((1, D), lambda i: (0, 0)),
        compiler_params=pltpu.CompilerParams(
            dimension_semantics=("arbitrary",),
        ),
    )(counts, emb_weight, rep2)
    # Final cross-lane L1 sum (tiny) kept outside the kernel so the kernel's
    # output stays lane-dense (unmasked vst, no in-kernel XLU scalar reduce).
    return jnp.sum(absdiff)


def objective_forward_ref(rep, expr, emb_weight):
    """Pure-JAX reference mirroring the PyTorch recursion exactly."""
    def compose(e):
        if isinstance(e, tuple):
            parts = [compose(ee) for ee in e]
            out = parts[0]
            for p in parts[1:]:
                out = out + p          # comp_fn = add
            return out
        return emb_weight[e]
    composed = compose(expr)
    return jnp.sum(jnp.abs(composed - rep))   # err_fn = L1


# TODO(synk): comp_fn / err_fn are arbitrary Python callables in the original
# module; only the additive comp_fn + L1 err_fn pair is implemented here (the
# counts/flatten trick is exact only for associative-commutative composition).

if __name__ == "__main__":
    # Small, deterministic setup consistent with the module:
    # vocab size V=16, repr_size D=128, expression with 8 leaves (one repeated
    # id to exercise the multiplicity path).
    V, D = 16, 128
    key = jax.random.PRNGKey(0)
    k_emb, k_rep = jax.random.split(key)

    # Original module zeroes emb weights; use deterministic random values so
    # the compose/err path is numerically non-trivial.
    emb_weight = jax.random.normal(k_emb, (V, D), dtype=jnp.float32) * 0.1
    rep = jax.random.normal(k_rep, (D,), dtype=jnp.float32)

    # A nested-tuple expression over token ids (the `expr` argument).
    expr = ((0, (1, 2)), ((3, 1), (5, (6, 7))))

    err = objective_forward(rep, expr, emb_weight)
    err = jax.block_until_ready(err)

    err_ref = objective_forward_ref(rep, expr, emb_weight)
    assert jnp.allclose(err, err_ref, rtol=1e-5, atol=1e-5), (err, err_ref)

    print("KERNEL_OK")
</pallas_src>

<mosaic_0001>
module attributes {stable_mosaic.version = 11 : i64} {
  func.func @objective_kernel(%arg0: i32, %arg1: memref<1x16xf32, #tpu.memory_space<vmem>>, %arg2: memref<16x128xf32, #tpu.memory_space<vmem>>, %arg3: memref<1x128xf32, #tpu.memory_space<vmem>>, %arg4: memref<1x128xf32, #tpu.memory_space<vmem>>) attributes {dimension_semantics = [#tpu.dimension_semantics<arbitrary>], iteration_bounds = array<i64: 1>, scalar_prefetch = 0 : i64, scratch_operands = 0 : i64, tpu.core_type = #tpu.core_type<tc>, window_params = [{pipeline_mode = #tpu.pipeline_mode<synchronous>, transform_indices = @transform_0, window_bounds = array<i64: 1, 16>}, {pipeline_mode = #tpu.pipeline_mode<synchronous>, transform_indices = @transform_1, window_bounds = array<i64: 16, 128>}, {pipeline_mode = #tpu.pipeline_mode<synchronous>, transform_indices = @transform_2, window_bounds = array<i64: 1, 128>}, {pipeline_mode = #tpu.pipeline_mode<synchronous>, transform_indices = @transform_3, window_bounds = array<i64: 1, 128>}]} {
    %c0 = arith.constant 0 : index
    %c0_0 = arith.constant 0 : index
    %0 = vector.load %arg1[%c0, %c0_0] : memref<1x16xf32, #tpu.memory_space<vmem>>, vector<1x16xf32>
    %c0_1 = arith.constant 0 : index
    %c0_2 = arith.constant 0 : index
    %1 = vector.load %arg2[%c0_1, %c0_2] : memref<16x128xf32, #tpu.memory_space<vmem>>, vector<16x128xf32>
    %cst = arith.constant dense<0.000000e+00> : vector<1x128xf32>
    %2 = tpu.matmul %0, %1, %cst {dimension_numbers = #tpu.dot_dimension_numbers<[1], [0], [0], [1], [0, 0, 1, 1], [], []>} : vector<1x16xf32>, vector<16x128xf32>, vector<1x128xf32> -> vector<1x128xf32>
    %c0_3 = arith.constant 0 : index
    %c0_4 = arith.constant 0 : index
    %3 = vector.load %arg3[%c0_3, %c0_4] : memref<1x128xf32, #tpu.memory_space<vmem>>, vector<1x128xf32>
    %4 = arith.subf %2, %3 : vector<1x128xf32>
    %5 = math.absf %4 : vector<1x128xf32>
    %c0_5 = arith.constant 0 : index
    %c0_6 = arith.constant 0 : index
    %6 = vector.load %arg4[%c0_5, %c0_6] : memref<1x128xf32, #tpu.memory_space<vmem>>, vector<1x128xf32>
    tpu.vector_store %arg4[%c0_5, %c0_6], %5 {strides = array<i32>} : memref<1x128xf32, #tpu.memory_space<vmem>>, vector<1x128xf32>,
    return
  }
  func.func @transform_0(%arg0: i32) -> (i32, i32) {
    %c0_i32 = arith.constant 0 : i32
    %c0_i32_0 = arith.constant 0 : i32
    %c0_i32_1 = arith.constant 0 : i32
    return %c0_i32, %c0_i32_0 : i32, i32
  }
  func.func @transform_1(%arg0: i32) -> (i32, i32) {
    %c0_i32 = arith.constant 0 : i32
    %c0_i32_0 = arith.constant 0 : i32
    %c0_i32_1 = arith.constant 0 : i32
    return %c0_i32, %c0_i32_0 : i32, i32
  }
  func.func @transform_2(%arg0: i32) -> (i32, i32) {
    %c0_i32 = arith.constant 0 : i32
    %c0_i32_0 = arith.constant 0 : i32
    %c0_i32_1 = arith.constant 0 : i32
    return %c0_i32, %c0_i32_0 : i32, i32
  }
  func.func @transform_3(%arg0: i32) -> (i32, i32) {
    %c0_i32 = arith.constant 0 : i32
    %c0_i32_0 = arith.constant 0 : i32
    %c0_i32_1 = arith.constant 0 : i32
    return %c0_i32, %c0_i32_0 : i32, i32
  }
}

</mosaic_0001>

<bundles_post_ra>
// kernel: tpu_custom_call.1
= control target key start
LH: loop header
LB: loop body
LE: loop exit
PB: predicated region body
PF: predicated region fallthrough
CT: control target
= control target key end

     0   :  { %8 = vsyncpa [#allocation3], 0  ;;  %s306_s0 = inlined_call_operand.hbm [shape: f32[1,16], index: 0, kind: input, shape index: {}]   ;;  %s307_s1 = inlined_call_operand.hbm [shape: f32[16,128], index: 1, kind: input, shape index: {}]   ;;  %s308_s2 = inlined_call_operand.vmem [shape: f32[1,128], index: 2, kind: input, shape index: {}]   ;;  %s309_s3 = inlined_call_operand.hbm [shape: f32[1,128], index: 3, kind: output, shape index: {}]  }
   0x1   :  { %9 = vsyncpa [#allocation6], 0 }
   0x2   :  { %10 = vsyncpa [#allocation4], 0  ;;  %s232_s12 = smov [#allocation2]   ;;  %s233_s14 = smov [#allocation5]  }
   0x3   :  { %s17_s13 = sshll.u32 %s232_s12, 4  ;;  %s26_s15 = sshll.u32 %s233_s14, 4  ;;  %s18_s13 = int_to_ptr.vmem [resolvable:$true] %s17_s13  ;;  %s260_s15 = int_to_ptr.vmem [resolvable:$true] %s26_s15 }
   0x4   :  { %s160_s18 = scalar_lea.hbm %s306_s0, 16 }
   0x5   :  { %p161_p0 = scmp.ne.s32.totalorder %s306_s0, %s160_s18  ;;  %p164_p1 = scmp.lt.u32.totalorder %s160_s18, %s306_s0 }
   0x7   :  { %p166_p2 = pnand %p164_p1, %p161_p0 }
   0x9   :  { %169 = shalt.err (!%p166_p2)
}
   0xa   :  { %s170_s23 = scalar_lea.vmem %s18_s13, 16  ;;  %s174_s24 = scalar_lea.vmem %s18_s13, 32 }
   0xb   :  { %p171_p3 = scmp.ne.s32.totalorder %s18_s13, %s170_s23  ;;  %p175_p4 = scmp.lt.s32.totalorder %s18_s13, %s18_s13 }
   0xc   :  { %p176_p5 = scmp.lt.s32.totalorder %s174_s24, %s170_s23 }
   0xe   :  { %p177_p6 = por %p176_p5, %p175_p4 }
  0x10   :  { %p178_p7 = pnand %p177_p6, %p171_p3 }
  0x12   :  { %181 = shalt.err (!%p178_p7)
}
  0x13   :  { %20 = dma.hbm_to_vmem [thread:$0]  %s306_s0, 16, %s18_s13, [#allocation3]  }
  0x14   :  { %s182_s29 = scalar_lea.hbm %s307_s1, 256 }
  0x15   :  { %p183_p8 = scmp.ne.s32.totalorder %s307_s1, %s182_s29  ;;  %p186_p9 = scmp.lt.u32.totalorder %s182_s29, %s307_s1 }
  0x17   :  { %p188_p10 = pnand %p186_p9, %p183_p8 }
  0x19   :  { %191 = shalt.err (!%p188_p10)
}
  0x1a   :  { %s192_s7 = scalar_lea.vmem %s260_s15, 256  ;;  %p197_p12 = scmp.lt.s32.totalorder %s260_s15, %s260_s15 }
  0x1b   :  { %p193_p11 = scmp.ne.s32.totalorder %s260_s15, %s192_s7  ;;  %p198_p13 = scmp.lt.s32.totalorder %s192_s7, %s192_s7 }
  0x1d   :  { %p199_p0 = por %p198_p13, %p197_p12 }
  0x1f   :  { %p200_p1 = pnand %p199_p0, %p193_p11 }
  0x21   :  { %203 = shalt.err (!%p200_p1)
}
  0x22   :  { %s234_s0 = smov 128   ;;  %s235_s8 = smov 8  }
  0x23   :  { %32 = dma.hbm_to_vmem [thread:$0]  %s307_s1, 256, %s260_s15, [#allocation6], %s234_s0, %s234_s0, %s235_s8  }
  0x24   :  { %226 = dma.done.wait [#allocation3], 16  }
  0x25   :  { %227 = vsyncadd [#allocation3], 4294967280 }
  0x26   :  { %228 = dma.done.wait [#allocation6], 256  }
  0x27   :  { %229 = vsyncadd [#allocation6], 4294967040  ;;  %v236_v0 = vmov 0.0|0.0   ;;  %vm237_vm0 = vmmov 0   ;;  %v238_v1 = vmov 0.0   ;;  %v42_v2 = vld [vmem:[#allocation5] sm:$0xff] }
  0x28   :  { %149 = vmatprep.subr.bf16.mxu0 %v236_v0  ;;  %146 = vmatprep.mubr.msk.f32.mxu0 %vm237_vm0, %v238_v1  ;;  %v43_v3 = vld [vmem:[#allocation5 + $0x8] sm:$0xff]  ;;  %v41_v5 = vld [vmem:[#allocation2] sm:$0x1]  ;;  %vm44_vm1 = vcmask 130048   ;;  %s239_s1 = smov [#allocation7]  }
  0x29   :  { %v150_v4 = vpack.c.bf16 %v43_v3, %v42_v2  ;;  %v118_v6 = vld [vmem:[%s308_s2] sm:$0x1]  ;;  %s128_s13 = sshll.u32 %s239_s1, 4  ;;  %s129_s13 = int_to_ptr.vmem [resolvable:$true] %s128_s13 }
  0x2a   :  { %s204_s14 = scalar_lea.vmem %s129_s13, 16  ;;  %s208_s15 = scalar_lea.vmem %s129_s13, 32 }
  0x2b   :  { %151 = vmatpush3.bf16.msra.mxu0 %v150_v4  ;;  %p205_p2 = scmp.ne.s32.totalorder %s129_s13, %s204_s14  ;;  %p209_p3 = scmp.lt.s32.totalorder %s129_s13, %s129_s13 }
  0x2c   :  { %p210_p4 = scmp.lt.s32.totalorder %s208_s15, %s204_s14 }
  0x2e   :  { %147 = vmatmul.mubr.msk.f32.vlgmr.msra.gmra.mrb[0].mxu0 %vm44_vm1, %v41_v5  ;;  %p211_p5 = por %p210_p4, %p209_p3 }
  0x30   :  { %p212_p6 = pnand %p211_p5, %p205_p2 }
 0x101   :  { %v114_v7 = vpop.f32.mrb[0].mxu0 }
 0x102   :  { %v119_v8 = vsub.f32 %v114_v7, %v118_v6  ;;  %v148_v9 = vpop.f32.mrb[1].mxu0 }
 0x104   :  { %v120_v10 = vand.u32 2147483647, %v119_v8 }
 0x106   :  { %121 = vst [vmem:[#allocation7] sm:$0x1] %v120_v10 }
 0x107   :  { %215 = shalt.err (!%p212_p6)
}
 0x108   :  { %s216_s2 = scalar_lea.hbm %s309_s3, 16 }
 0x109   :  { %p217_p7 = scmp.ne.s32.totalorder %s309_s3, %s216_s2  ;;  %p220_p8 = scmp.lt.u32.totalorder %s216_s2, %s309_s3 }
 0x10b   :  { %p222_p9 = pnand %p220_p8, %p217_p7 }
 0x10d   :  { %225 = shalt.err (!%p222_p9)
}
 0x10e   :  { %131 = dma.vmem_to_hbm [thread:$0]  %s129_s13, 16, %s309_s3, [#allocation4]  }
 0x10f   :  { %230 = dma.done.wait [#allocation4], 16  }
 0x110   :  { %231 = vsyncadd [#allocation4], 4294967280 }
 0x111   :  { %135 = vsyncpa [#allocation3], 1 }
 0x112   :  { %136 = vsyncpa [#allocation6], 1 }
 0x113   :  { %137 = vsyncpa [#allocation4], 1 }

</bundles_post_ra>
